<compile_context>
chip_gen: v7x
topology: tpu7x:2x2x1
jax: 0.10.0
libtpu: 0.0.40
codegen_flags: <defaults>
</compile_context>

<pallas_src>
import jax
import jax.numpy as jnp
from jax.experimental import pallas as pl
from jax.experimental.pallas import tpu as pltpu

LANE = 128


def gcn_kernel(x_ref, a_ref, w1_ref, w2_ref, out_ref):
    # bf16 storage -> f32 compute. Upcasting A/W1/W2 in-register is a tiny VPU
    # pass; keeping every intermediate in f32 (no bf16 re-quantization) removes
    # the compounding rounding error flagged in review.
    a = a_ref[...].astype(jnp.float32)        # (N, N)
    x = x_ref[...]                            # (N, D)  already f32
    w1 = w1_ref[...].astype(jnp.float32)      # (D, Hp)
    w2 = w2_ref[...].astype(jnp.float32)      # (Hp, Cp)

    # Layer 1, reassociated (mathematically exact): h1 = ReLU((A @ X) @ W1);
    # D < H so this ordering does strictly fewer MACs than A @ (X @ W1).
    # TODO(synk): torch.sparse.mm / SparseDropout have no clean Pallas sparse
    # equivalent; support and features are handled densely (dropout_rate=0.0
    # makes both dropout modules identities, so they are omitted).
    ax = jnp.dot(a, x, preferred_element_type=jnp.float32)                 # (N, D)
    h1 = jnp.maximum(jnp.dot(ax, w1, preferred_element_type=jnp.float32), 0.0)

    # Layer 2: out = A @ (h1 @ W2). Zero-padded W2 columns keep the padded
    # output columns exactly zero, so the writeback is a full unmasked vst.
    pre2 = jnp.dot(h1, w2, preferred_element_type=jnp.float32)             # (N, Cp)
    out_ref[...] = jnp.dot(a, pre2, preferred_element_type=jnp.float32)    # (N, Cp)


def prepare_gcn_params(w1, w2):
    """One-time parameter preparation (do NOT call per forward).

    Zero-pads the hidden dim (200 -> 256) and class dim (10 -> 128) to
    lane-dense multiples of 128 and casts to bf16. Zero rows/cols keep the
    math exact through the ReLU; bf16 halves the weight DMA bytes per call.
    """
    d, h = w1.shape
    h2, c = w2.shape
    assert h2 == h
    h_pad = pl.cdiv(h, LANE) * LANE
    c_pad = pl.cdiv(c, LANE) * LANE
    w1p = jnp.pad(w1, ((0, 0), (0, h_pad - h))).astype(jnp.bfloat16)
    w2p = jnp.pad(w2, ((0, h_pad - h), (0, c_pad - c))).astype(jnp.bfloat16)
    return w1p, w2p


def prepare_support(a):
    """One-time support preparation: dense normalized adjacency stored as bf16."""
    return a.astype(jnp.bfloat16)


def gcn_forward_padded(x, a_bf16, w1p, w2p):
    """Fused GCN forward. Returns padded logits (N, Cp); columns >= num_classes
    are exactly zero — the consumer slices [:, :num_classes] lazily (no slice
    kernel inside the forward).

    At these shapes everything is resident in VMEM with no grid (gridless is
    optimal: compute is ~1.8 MMAC, the call is overhead/DMA-bound).

    Scaling notes for large N (A = N*N), not needed at N=64:
      * v7x (2 TCs, 64 MiB VMEM, 32 MiB scoped default): tile A by rows with
        grid=(N//TM,) and dimension_semantics=("parallel",) so both
        TensorCores are used; whole-A residency in bf16 tops out ~N=2-2.5k.
      * v5e/v6e (128 MiB physical, 16/32 MiB scoped default): to keep A
        resident past the scoped default, pass
        compiler_params=pltpu.CompilerParams(vmem_limit_bytes=...) sized to
        A + weights + f32 intermediates; otherwise row-tile as above.
    """
    n, _ = x.shape
    hp_ = w1p.shape[1]
    cp = w2p.shape[1]
    assert a_bf16.shape == (n, n) and w2p.shape[0] == hp_

    return pl.pallas_call(
        gcn_kernel,
        out_shape=jax.ShapeDtypeStruct((n, cp), jnp.float32),
        in_specs=[
            pl.BlockSpec(memory_space=pltpu.MemorySpace.VMEM),   # X  (f32)
            pl.BlockSpec(memory_space=pltpu.MemorySpace.VMEM),   # A  (bf16)
            pl.BlockSpec(memory_space=pltpu.MemorySpace.VMEM),   # W1 (bf16, padded)
            pl.BlockSpec(memory_space=pltpu.MemorySpace.VMEM),   # W2 (bf16, padded)
        ],
        out_specs=pl.BlockSpec(memory_space=pltpu.MemorySpace.VMEM),
    )(x, a_bf16, w1p, w2p)


if __name__ == "__main__":
    # Small, deterministic synthetic problem.
    N = 64            # number of graph nodes
    input_dim = 32    # node feature dim
    hidden = 200      # fixed by GCN.layer1 (output_dim=200)
    num_classes = 10  # GCN default

    key = jax.random.PRNGKey(0)
    k_x, k_a, k_w1, k_w2 = jax.random.split(key, 4)

    # Dense stand-ins for the sparse feature matrix and sparse support.
    x = jax.random.normal(k_x, (N, input_dim), dtype=jnp.float32)
    a = jax.random.normal(k_a, (N, N), dtype=jnp.float32) / jnp.sqrt(N)

    # Parameters: W ~ randn(input_dim, output_dim), bias=False in the module.
    w1 = jax.random.normal(k_w1, (input_dim, hidden), dtype=jnp.float32)
    w2 = jax.random.normal(k_w2, (hidden, num_classes), dtype=jnp.float32)

    # One-time preparation (hoisted out of the per-call forward).
    w1p, w2p = prepare_gcn_params(w1, w2)
    a_bf16 = prepare_support(a)

    fwd = jax.jit(gcn_forward_padded)
    out_padded = jax.block_until_ready(fwd(x, a_bf16, w1p, w2p))
    assert out_padded.shape == (N, w2p.shape[1])

    # Consumer-side lazy slice (kept out of the forward itself).
    out = out_padded[:, :num_classes]
    assert out.shape == (N, num_classes)

    hpdot = lambda l, r: jnp.dot(l, r, precision=jax.lax.Precision.HIGHEST)

    # Reference 1 (tight): identical operand quantization (bf16 A/W1/W2) and
    # identical association as the kernel, all intermediates in f32.
    a_q = a_bf16.astype(jnp.float32)
    w1_q = w1p.astype(jnp.float32)
    w2_q = w2p.astype(jnp.float32)
    h1_r = jnp.maximum(hpdot(hpdot(a_q, x), w1_q), 0.0)
    ref_tight = hpdot(a_q, hpdot(h1_r, w2_q))[:, :num_classes]
    assert jnp.allclose(out, ref_tight, atol=5e-2, rtol=5e-3)
    # Padded class columns stay (numerically) zero.
    assert jnp.all(jnp.abs(out_padded[:, num_classes:]) <= 1e-5)

    # Reference 2 (semantic): exact f32 module math; the only differences are
    # bf16 rounding of A/W1/W2 and the (A@X)@W1 reassociation.
    ref_f32 = hpdot(a, hpdot(jnp.maximum(hpdot(a, hpdot(x, w1)), 0.0), w2))
    assert jnp.allclose(out, ref_f32, atol=1.0, rtol=5e-2)
    rel_err = jnp.linalg.norm(out - ref_f32) / jnp.linalg.norm(ref_f32)
    assert rel_err < 1e-2

    print("KERNEL_OK")
</pallas_src>

<mosaic_0001>
module attributes {stable_mosaic.version = 11 : i64} {
  func.func @gcn_kernel(%arg0: memref<64x32xf32, #tpu.memory_space<vmem>>, %arg1: memref<64x64xbf16, #tpu.memory_space<vmem>>, %arg2: memref<32x256xbf16, #tpu.memory_space<vmem>>, %arg3: memref<256x128xbf16, #tpu.memory_space<vmem>>, %arg4: memref<64x128xf32, #tpu.memory_space<vmem>>) attributes {dimension_semantics = [], scalar_prefetch = 0 : i64, scratch_operands = 0 : i64, tpu.core_type = #tpu.core_type<tc>} {
    %c0 = arith.constant 0 : index
    %c0_0 = arith.constant 0 : index
    %0 = vector.load %arg1[%c0, %c0_0] : memref<64x64xbf16, #tpu.memory_space<vmem>>, vector<64x64xbf16>
    %1 = arith.extf %0 : vector<64x64xbf16> to vector<64x64xf32>
    %c0_1 = arith.constant 0 : index
    %c0_2 = arith.constant 0 : index
    %2 = vector.load %arg0[%c0_1, %c0_2] : memref<64x32xf32, #tpu.memory_space<vmem>>, vector<64x32xf32>
    %c0_3 = arith.constant 0 : index
    %c0_4 = arith.constant 0 : index
    %3 = vector.load %arg2[%c0_3, %c0_4] : memref<32x256xbf16, #tpu.memory_space<vmem>>, vector<32x256xbf16>
    %4 = arith.extf %3 : vector<32x256xbf16> to vector<32x256xf32>
    %c0_5 = arith.constant 0 : index
    %c0_6 = arith.constant 0 : index
    %5 = vector.load %arg3[%c0_5, %c0_6] : memref<256x128xbf16, #tpu.memory_space<vmem>>, vector<256x128xbf16>
    %6 = arith.extf %5 : vector<256x128xbf16> to vector<256x128xf32>
    %cst = arith.constant dense<0.000000e+00> : vector<64x32xf32>
    %7 = tpu.matmul %1, %2, %cst {dimension_numbers = #tpu.dot_dimension_numbers<[1], [0], [0], [1], [0, 0, 1, 1], [], []>} : vector<64x64xf32>, vector<64x32xf32>, vector<64x32xf32> -> vector<64x32xf32>
    %cst_7 = arith.constant dense<0.000000e+00> : vector<64x256xf32>
    %8 = tpu.matmul %7, %4, %cst_7 {dimension_numbers = #tpu.dot_dimension_numbers<[1], [0], [0], [1], [0, 0, 1, 1], [], []>} : vector<64x32xf32>, vector<32x256xf32>, vector<64x256xf32> -> vector<64x256xf32>
    %cst_8 = arith.constant 0.000000e+00 : f32
    %9 = vector.broadcast %cst_8 : f32 to vector<64x256xf32>
    %10 = arith.maximumf %8, %9 : vector<64x256xf32>
    %cst_9 = arith.constant dense<0.000000e+00> : vector<64x128xf32>
    %11 = tpu.matmul %10, %6, %cst_9 {dimension_numbers = #tpu.dot_dimension_numbers<[1], [0], [0], [1], [0, 0, 1, 1], [], []>} : vector<64x256xf32>, vector<256x128xf32>, vector<64x128xf32> -> vector<64x128xf32>
    %cst_10 = arith.constant dense<0.000000e+00> : vector<64x128xf32>
    %12 = tpu.matmul %1, %11, %cst_10 {dimension_numbers = #tpu.dot_dimension_numbers<[1], [0], [0], [1], [0, 0, 1, 1], [], []>} : vector<64x64xf32>, vector<64x128xf32>, vector<64x128xf32> -> vector<64x128xf32>
    %c0_11 = arith.constant 0 : index
    %c0_12 = arith.constant 0 : index
    %13 = vector.load %arg4[%c0_11, %c0_12] : memref<64x128xf32, #tpu.memory_space<vmem>>, vector<64x128xf32>
    tpu.vector_store %arg4[%c0_11, %c0_12], %12 {strides = array<i32>} : memref<64x128xf32, #tpu.memory_space<vmem>>, vector<64x128xf32>,
    return
  }
}

</mosaic_0001>

<bundles_post_ra>
// kernel: gcn_forward_padded.1
= control target key start
LH: loop header
LB: loop body
LE: loop exit
PB: predicated region body
PF: predicated region fallthrough
CT: control target
= control target key end

     0   :  { %9 = vsyncpa [#allocation3], 0  ;;  %s1226_s0 = inlined_call_operand.vmem [shape: f32[64,32], index: 0, kind: input, shape index: {}]   ;;  %s1227_s1 = inlined_call_operand.vmem [shape: bf16[64,64], index: 1, kind: input, shape index: {}]   ;;  %s1228_s2 = inlined_call_operand.vmem [shape: bf16[32,256], index: 2, kind: input, shape index: {}]   ;;  %s1229_s3 = inlined_call_operand.hbm [shape: bf16[256,128], index: 3, kind: input, shape index: {}]   ;;  %s1230_s4 = inlined_call_operand.hbm [shape: f32[64,128], index: 4, kind: output, shape index: {}]  }
   0x1   :  { %10 = vsyncpa [#allocation4], 0  ;;  %s1054_s15 = smov [#allocation2]   ;;  %s1006_s19 = scalar_lea.hbm %s1229_s3, 2048 }
   0x2   :  { %s22_s16 = sshll.u32 %s1054_s15, 4  ;;  %p1007_p0 = scmp.ne.s32.totalorder %s1229_s3, %s1006_s19  ;;  %s23_s16 = int_to_ptr.vmem [resolvable:$true] %s22_s16 }
   0x3   :  { %p1010_p1 = scmp.lt.u32.totalorder %s1006_s19, %s1229_s3 }
   0x5   :  { %p1012_p2 = pnand %p1010_p1, %p1007_p0 }
   0x7   :  { %1015 = shalt.err (!%p1012_p2)
}
   0x8   :  { %s1016_s24 = scalar_lea.vmem %s23_s16, 2048  ;;  %p1021_p4 = scmp.lt.s32.totalorder %s23_s16, %s23_s16 }
   0x9   :  { %p1017_p3 = scmp.ne.s32.totalorder %s23_s16, %s1016_s24  ;;  %p1022_p5 = scmp.lt.s32.totalorder %s1016_s24, %s1016_s24 }
   0xb   :  { %p1023_p6 = por %p1022_p5, %p1021_p4 }
   0xd   :  { %p1024_p7 = pnand %p1023_p6, %p1017_p3 }
   0xf   :  { %1027 = shalt.err (!%p1024_p7)
}
  0x10   :  { %s1055_s25 = smov 64   ;;  %s1056_s26 = smov 4  }
  0x11   :  { %28 = dma.hbm_to_vmem [thread:$0]  %s1229_s3, 2048, %s23_s16, [#allocation3], %s1055_s25, %s1055_s25, %s1056_s26  }
  0x12   :  { %1050 = dma.done.wait [#allocation3], 2048  }
  0x13   :  { %1051 = vsyncadd [#allocation3], 4294965248  ;;  %v48_v0 = vld [vmem:[%s1226_s0] sm:$0xff]  ;;  %v49_v1 = vld [vmem:[%s1226_s0 + $0x8] sm:$0xff]  ;;  %vm132_vm0 = vcmask 523264   ;;  %v1057_v28 = vmov 0.0  }
  0x14   :  { %v50_v2 = vld [vmem:[%s1226_s0 + $0x10] sm:$0xff]  ;;  %v917_v3 = vpack.c.bf16 %v49_v1, %v48_v0  ;;  %v51_v4 = vld [vmem:[%s1226_s0 + $0x18] sm:$0xff]  ;;  %v52_v6 = vld [vmem:[%s1226_s0 + $0x20] sm:$0xff]  ;;  %351 = vmatprep.mubr.f32.mxu1 %v1057_v28  ;;  %vm262_vm1 = vcmask 261120  }
  0x15   :  { %v921_v5 = vpack.c.bf16 %v51_v4, %v50_v2  ;;  %v53_v7 = vld [vmem:[%s1226_s0 + $0x28] sm:$0xff]  ;;  %v1119_v8 = vld [vmem:[%s1227_s1] sm:$0xff]   ;;  %v54_v13 = vld [vmem:[%s1226_s0 + $0x30] sm:$0xff] }
  0x16   :  { %918 = vmatprep.subr.bf16.mxu0 %v917_v3  ;;  %v677_v9 = vunpack.c.l.bf16 %v1119_v8  ;;  %v1000_v10 = vld [vmem:[%s1228_s2 + $0x4] ss:$8 sps:$4 sm:$0xff]   ;;  %v925_v11 = vpack.c.bf16 %v53_v7, %v52_v6  ;;  %v1002_v12 = vld [vmem:[%s1228_s2] ss:$8 sps:$4 sm:$0xff]   ;;  %v55_v14 = vld [vmem:[%s1226_s0 + $0x38] sm:$0xff]  ;;  %v678_v19 = vunpack.c.h.bf16 %v1119_v8 }
  0x17   :  { %920 = vmatpush3.bf16.msra.mxu0 %v917_v3  ;;  %934 = vmatprep.subr.bf16.mxu1 %v1000_v10  ;;  %v1003_v15 = vld [vmem:[%s1228_s2 + $0x14] ss:$8 sps:$4 sm:$0xff]   ;;  %v1005_v16 = vld [vmem:[%s1228_s2 + $0x10] ss:$8 sps:$4 sm:$0xff]   ;;  %v929_v17 = vpack.c.bf16 %v55_v14, %v54_v13  ;;  %v1144_v18 = vld [vmem:[%s1227_s1 + $0x8] sm:$0xff]  }
  0x18   :  { %922 = vmatprep.subr.bf16.mxu0 %v921_v5  ;;  %877 = vmatprep.mubr.msk.f32.mxu0 %vm132_vm0, %v677_v9  ;;  %v681_v20 = vunpack.c.l.bf16 %v1144_v18  ;;  %v1151_v21 = vld [vmem:[%s1227_s1 + $0x10] sm:$0xff]   ;;  %v682_v22 = vunpack.c.h.bf16 %v1144_v18  ;;  %v1164_v24 = vld [vmem:[%s1227_s1 + $0x18] sm:$0xff]   ;;  %v765_v29 = vld [vmem:[#allocation2 + $0x40] sm:$0xff]   ;;  %s1058_s1 = smov [#allocation5]  }
  0x19   :  { %936 = vmatpush1.bf16.msra.mxu1 %v1002_v12  ;;  %v685_v23 = vunpack.c.l.bf16 %v1151_v21  ;;  %v686_v25 = vunpack.c.h.bf16 %v1151_v21  ;;  %v689_v26 = vunpack.c.l.bf16 %v1164_v24  ;;  %v690_v27 = vunpack.c.h.bf16 %v1164_v24  ;;  %v692_v31 = vld [vmem:[#allocation2] sm:$0xff]   ;;  %v766_v33 = vld [vmem:[#allocation2 + $0x48] sm:$0xff]   ;;  %v767_v37 = vld [vmem:[#allocation2 + $0x50] sm:$0xff]   ;;  %s639_s6 = sshll.u32 %s1058_s1, 4  ;;  %s640_s6 = int_to_ptr.vmem [resolvable:$true] %s639_s6 }
  0x1a   :  { %938 = vmatprep.subr.bf16.mxu1 %v1003_v15  ;;  %v758_v35 = vld [vmem:[#allocation2 + $0x8] sm:$0xff]   ;;  %v759_v39 = vld [vmem:[#allocation2 + $0x10] sm:$0xff]   ;;  %v768_v41 = vld [vmem:[#allocation2 + $0x58] sm:$0xff]   ;;  %s1028_s7 = scalar_lea.vmem %s640_s6, 1024  ;;  %p1033_p9 = scmp.lt.s32.totalorder %s640_s6, %s640_s6 }
  0x1b   :  { %924 = vmatpush3.bf16.msra.mxu0 %v921_v5  ;;  %v760_v43 = vld [vmem:[#allocation2 + $0x18] sm:$0xff]   ;;  %v769_v45 = vld [vmem:[#allocation2 + $0x60] sm:$0xff]   ;;  %v770_v47 = vld [vmem:[#allocation2 + $0x68] sm:$0xff]   ;;  %p1029_p8 = scmp.ne.s32.totalorder %s640_s6, %s1028_s7  ;;  %p1034_p10 = scmp.lt.s32.totalorder %s1028_s7, %s1028_s7 }
  0x1c   :  { %926 = vmatprep.subr.bf16.mxu0 %v925_v11  ;;  %v761_v46 = vld [vmem:[#allocation2 + $0x20] sm:$0xff]   ;;  %v762_v48 = vld [vmem:[#allocation2 + $0x28] sm:$0xff]   ;;  %v771_v49 = vld [vmem:[#allocation2 + $0x70] sm:$0xff]  }
  0x1d   :  { %940 = vmatpush1.bf16.msra.mxu1 %v1005_v16  ;;  %v763_v50 = vld [vmem:[#allocation2 + $0x30] sm:$0xff]   ;;  %v772_v51 = vld [vmem:[#allocation2 + $0x78] sm:$0xff]   ;;  %p1035_p11 = por %p1034_p10, %p1033_p9 }
  0x1e   :  { %942 = vmatprep.subr.bf16.mxu1 %v765_v29  ;;  %v764_v52 = vld [vmem:[#allocation2 + $0x38] sm:$0xff]  }
  0x1f   :  { %928 = vmatpush3.bf16.msra.mxu0 %v925_v11  ;;  %p1036_p12 = pnand %p1035_p11, %p1029_p8 }
  0x20   :  { %930 = vmatprep.subr.bf16.mxu0 %v929_v17 }
  0x23   :  { %932 = vmatpush3.bf16.msra.mxu0 %v929_v17 }
  0x26   :  { %878 = vmatmul.mubr.msk.f32.vlgmr.msra.gmra.mrb[0].mxu0 %vm132_vm0, %v678_v19 }
  0x27   :  { %880 = vmatprep.mubr.msk.f32.mxu0 %vm132_vm0, %v681_v20 }
  0x2a   :  { %881 = vmatmul.mubr.msk.f32.gmra.mrb[2].mxu0 %vm132_vm0, %v682_v22 }
  0x2b   :  { %883 = vmatprep.mubr.msk.f32.mxu0 %vm132_vm0, %v685_v23 }
  0x2e   :  { %884 = vmatmul.mubr.msk.f32.gmra.mrb[4].mxu0 %vm132_vm0, %v686_v25 }
  0x2f   :  { %886 = vmatprep.mubr.msk.f32.mxu0 %vm132_vm0, %v689_v26 }
  0x32   :  { %887 = vmatmul.mubr.msk.f32.gmra.mrb[6].mxu0 %vm132_vm0, %v690_v27 }
  0x33   :  { %905 = vmatprep.mubr.msk.f32.mxu0 %vm132_vm0, %v677_v9 }
  0xf9   :  { %v879_v30 = vpop.f32.mrb[0].mxu0 }
  0xfa   :  { %v223_v32 = vpop.f32.mrb[1].mxu0 }
  0xfb   :  { %659 = vmatmul.mubr.msk.f32.vlgmr.msra.gmra.mrb[0].mxu1 %vm262_vm1, %v223_v32 }
  0xfc   :  { %357 = vmatprep.mubr.f32.mxu1 %v1057_v28  ;;  %944 = vmatpush3.bf16.msra.mxu1 %v692_v31 }
  0xfd   :  { %v882_v34 = vpop.f32.mrb[2].mxu0  ;;  %946 = vmatprep.subr.bf16.mxu1 %v766_v33 }
  0xfe   :  { %v233_v36 = vpop.f32.mrb[3].mxu0 }
  0xff   :  { %660 = vmatmul.mubr.msk.f32.gmra.mrb[2].mxu1 %vm262_vm1, %v879_v30 }
 0x100   :  { %363 = vmatprep.mubr.f32.mxu1 %v1057_v28  ;;  %948 = vmatpush3.bf16.msra.mxu1 %v758_v35 }
 0x101   :  { %v885_v38 = vpop.f32.mrb[4].mxu0  ;;  %950 = vmatprep.subr.bf16.mxu1 %v767_v37 }
 0x102   :  { %v243_v40 = vpop.f32.mrb[5].mxu0 }
 0x103   :  { %661 = vmatmul.mubr.msk.f32.gmra.mrb[4].mxu1 %vm262_vm1, %v233_v36 }
 0x104   :  { %369 = vmatprep.mubr.f32.mxu1 %v1057_v28  ;;  %952 = vmatpush3.bf16.msra.mxu1 %v759_v39 }
 0x105   :  { %v888_v42 = vpop.f32.mrb[6].mxu0  ;;  %954 = vmatprep.subr.bf16.mxu1 %v768_v41 }
 0x106   :  { %v253_v44 = vpop.f32.mrb[7].mxu0 }
 0x107   :  { %662 = vmatmul.mubr.msk.f32.gmra.mrb[6].mxu1 %vm262_vm1, %v882_v34 }
 0x108   :  { %375 = vmatprep.mubr.f32.mxu1 %v1057_v28  ;;  %956 = vmatpush3.bf16.msra.mxu1 %v760_v43 }
 0x109   :  { %958 = vmatprep.subr.bf16.mxu1 %v769_v45 }
 0x10b   :  { %663 = vmatmul.mubr.msk.f32.gmra.mrb[8].mxu1 %vm262_vm1, %v243_v40 }
 0x10c   :  { %381 = vmatprep.mubr.f32.mxu1 %v1057_v28  ;;  %960 = vmatpush3.bf16.msra.mxu1 %v761_v46 }
 0x10d   :  { %962 = vmatprep.subr.bf16.mxu1 %v770_v47 }
 0x10f   :  { %664 = vmatmul.mubr.msk.f32.gmra.mrb[10].mxu1 %vm262_vm1, %v885_v38 }
 0x110   :  { %387 = vmatprep.mubr.f32.mxu1 %v1057_v28  ;;  %964 = vmatpush3.bf16.msra.mxu1 %v762_v48 }
 0x111   :  { %966 = vmatprep.subr.bf16.mxu1 %v771_v49 }
 0x113   :  { %665 = vmatmul.mubr.msk.f32.gmra.mrb[12].mxu1 %vm262_vm1, %v253_v44 }
 0x114   :  { %393 = vmatprep.mubr.f32.mxu1 %v1057_v28  ;;  %968 = vmatpush3.bf16.msra.mxu1 %v763_v50 }
 0x115   :  { %970 = vmatprep.subr.bf16.mxu1 %v772_v51 }
 0x117   :  { %666 = vmatmul.mubr.msk.f32.gmra.mrb[14].mxu1 %vm262_vm1, %v888_v42 }
 0x118   :  { %972 = vmatpush3.bf16.msra.mxu1 %v764_v52 }
 0x1ce   :  { %v353_v53 = vpop.f32.mrb[0].mxu1 }
 0x1cf   :  { %v355_v54 = vpop.f32.mrb[1].mxu1  ;;  %v400_v56 = vmax.f32 %v353_v53, 0.0 }
 0x1d0   :  { %v401_v55 = vmax.f32 %v355_v54, 0.0 }
 0x1d2   :  { %v359_v57 = vpop.f32.mrb[2].mxu1  ;;  %480 = vmatprep.mubr.f32.mxu1 %v401_v55 }
 0x1d3   :  { %v361_v58 = vpop.f32.mrb[3].mxu1  ;;  %481 = vmatmul.mubr.f32.vlgmr.msra.gmra.mrb[16].mxu1 %v400_v56  ;;  %v402_v60 = vmax.f32 %v359_v57, 0.0 }
 0x1d4   :  { %v403_v59 = vmax.f32 %v361_v58, 0.0 }
 0x1d6   :  { %v365_v61 = vpop.f32.mrb[4].mxu1  ;;  %485 = vmatprep.mubr.f32.mxu1 %v403_v59 }
 0x1d7   :  { %v367_v62 = vpop.f32.mrb[5].mxu1  ;;  %486 = vmatmul.mubr.f32.gmra.mrb[18].mxu1 %v402_v60  ;;  %v404_v0 = vmax.f32 %v365_v61, 0.0 }
 0x1d8   :  { %v405_v63 = vmax.f32 %v367_v62, 0.0 }
 0x1da   :  { %v371_v1 = vpop.f32.mrb[6].mxu1  ;;  %490 = vmatprep.mubr.f32.mxu1 %v405_v63 }
 0x1db   :  { %v373_v2 = vpop.f32.mrb[7].mxu1  ;;  %491 = vmatmul.mubr.f32.gmra.mrb[20].mxu1 %v404_v0  ;;  %v406_v4 = vmax.f32 %v371_v1, 0.0 }
 0x1dc   :  { %v407_v3 = vmax.f32 %v373_v2, 0.0 }
 0x1de   :  { %v377_v5 = vpop.f32.mrb[8].mxu1  ;;  %495 = vmatprep.mubr.f32.mxu1 %v407_v3 }
 0x1df   :  { %v379_v6 = vpop.f32.mrb[9].mxu1  ;;  %496 = vmatmul.mubr.f32.gmra.mrb[22].mxu1 %v406_v4  ;;  %v408_v9 = vmax.f32 %v377_v5, 0.0 }
 0x1e0   :  { %v409_v7 = vmax.f32 %v379_v6, 0.0 }
 0x1e2   :  { %v383_v10 = vpop.f32.mrb[10].mxu1  ;;  %500 = vmatprep.mubr.f32.mxu1 %v409_v7 }
 0x1e3   :  { %v385_v11 = vpop.f32.mrb[11].mxu1  ;;  %501 = vmatmul.mubr.f32.gmra.mrb[24].mxu1 %v408_v9  ;;  %v410_v13 = vmax.f32 %v383_v10, 0.0 }
 0x1e4   :  { %v411_v12 = vmax.f32 %v385_v11, 0.0 }
 0x1e6   :  { %v389_v14 = vpop.f32.mrb[12].mxu1  ;;  %505 = vmatprep.mubr.f32.mxu1 %v411_v12 }
 0x1e7   :  { %v391_v15 = vpop.f32.mrb[13].mxu1  ;;  %506 = vmatmul.mubr.f32.gmra.mrb[26].mxu1 %v410_v13  ;;  %v412_v17 = vmax.f32 %v389_v14, 0.0 }
 0x1e8   :  { %v413_v16 = vmax.f32 %v391_v15, 0.0 }
 0x1ea   :  { %v395_v28 = vpop.f32.mrb[14].mxu1  ;;  %510 = vmatprep.mubr.f32.mxu1 %v413_v16 }
 0x1eb   :  { %v397_v29 = vpop.f32.mrb[15].mxu1  ;;  %511 = vmatmul.mubr.f32.gmra.mrb[28].mxu1 %v412_v17  ;;  %v414_v31 = vmax.f32 %v395_v28, 0.0 }
 0x1ec   :  { %v415_v30 = vmax.f32 %v397_v29, 0.0 }
 0x1ee   :  { %515 = vmatprep.mubr.f32.mxu1 %v415_v30 }
 0x1ef   :  { %516 = vmatmul.mubr.f32.gmra.mrb[30].mxu1 %v414_v31 }
 0x2a6   :  { %v821_v32 = vpop.f32.mrb[16].mxu1 }
 0x2a7   :  { %v822_v33 = vpop.f32.mrb[17].mxu1 }
 0x2a8   :  { %v823_v34 = vadd.f32 %v822_v33, %v821_v32 }
 0x2aa   :  { %v824_v35 = vpop.f32.mrb[18].mxu1 }
 0x2ab   :  { %v825_v36 = vpop.f32.mrb[19].mxu1 }
 0x2ac   :  { %v826_v37 = vadd.f32 %v825_v36, %v824_v35 }
 0x2ae   :  { %v973_v38 = vpack.c.bf16 %v826_v37, %v823_v34  ;;  %v827_v39 = vpop.f32.mrb[20].mxu1 }
 0x2af   :  { %v828_v40 = vpop.f32.mrb[21].mxu1 }
 0x2b0   :  { %v829_v41 = vadd.f32 %v828_v40, %v827_v39  ;;  %974 = vmatprep.subr.bf16.mxu0 %v973_v38 }
 0x2b1   :  { %976 = vmatpush3.bf16.msra.mxu0 %v973_v38 }
 0x2b2   :  { %v830_v42 = vpop.f32.mrb[22].mxu1 }
 0x2b3   :  { %v831_v43 = vpop.f32.mrb[23].mxu1 }
 0x2b4   :  { %v832_v44 = vadd.f32 %v831_v43, %v830_v42 }
 0x2b6   :  { %v977_v45 = vpack.c.bf16 %v832_v44, %v829_v41  ;;  %v833_v46 = vpop.f32.mrb[24].mxu1 }
 0x2b7   :  { %v834_v47 = vpop.f32.mrb[25].mxu1 }
 0x2b8   :  { %v835_v48 = vadd.f32 %v834_v47, %v833_v46  ;;  %978 = vmatprep.subr.bf16.mxu0 %v977_v45 }
 0x2b9   :  { %980 = vmatpush3.bf16.msra.mxu0 %v977_v45 }
 0x2ba   :  { %v836_v49 = vpop.f32.mrb[26].mxu1 }
 0x2bb   :  { %v837_v50 = vpop.f32.mrb[27].mxu1 }
 0x2bc   :  { %v838_v51 = vadd.f32 %v837_v50, %v836_v49 }
 0x2be   :  { %v981_v52 = vpack.c.bf16 %v838_v51, %v835_v48  ;;  %v839_v53 = vpop.f32.mrb[28].mxu1 }
 0x2bf   :  { %v840_v54 = vpop.f32.mrb[29].mxu1 }
 0x2c0   :  { %v841_v55 = vadd.f32 %v840_v54, %v839_v53  ;;  %982 = vmatprep.subr.bf16.mxu0 %v981_v52 }
 0x2c1   :  { %984 = vmatpush3.bf16.msra.mxu0 %v981_v52 }
 0x2c2   :  { %v842_v56 = vpop.f32.mrb[30].mxu1 }
 0x2c3   :  { %v843_v57 = vpop.f32.mrb[31].mxu1 }
 0x2c4   :  { %v844_v58 = vadd.f32 %v843_v57, %v842_v56 }
 0x2c6   :  { %v985_v59 = vpack.c.bf16 %v844_v58, %v841_v55 }
 0x2c8   :  { %986 = vmatprep.subr.bf16.mxu0 %v985_v59 }
 0x2c9   :  { %988 = vmatpush3.bf16.msra.mxu0 %v985_v59 }
 0x2cc   :  { %906 = vmatmul.mubr.msk.f32.vlgmr.msra.gmra.mrb[8].mxu0 %vm132_vm0, %v678_v19 }
 0x2cd   :  { %908 = vmatprep.mubr.msk.f32.mxu0 %vm132_vm0, %v681_v20 }
 0x2d0   :  { %909 = vmatmul.mubr.msk.f32.gmra.mrb[10].mxu0 %vm132_vm0, %v682_v22 }
 0x2d1   :  { %911 = vmatprep.mubr.msk.f32.mxu0 %vm132_vm0, %v685_v23 }
 0x2d4   :  { %912 = vmatmul.mubr.msk.f32.gmra.mrb[12].mxu0 %vm132_vm0, %v686_v25 }
 0x2d5   :  { %914 = vmatprep.mubr.msk.f32.mxu0 %vm132_vm0, %v689_v26 }
 0x2d8   :  { %915 = vmatmul.mubr.msk.f32.gmra.mrb[14].mxu0 %vm132_vm0, %v690_v27 }
 0x39f   :  { %v907_v8 = vpop.f32.mrb[8].mxu0 }
 0x3a0   :  { %627 = vst [vmem:[#allocation5 + $0x8] sm:$0xff] %v907_v8  ;;  %v587_v18 = vpop.f32.mrb[9].mxu0 }
 0x3a1   :  { %626 = vst [vmem:[#allocation5] sm:$0xff] %v587_v18 }
 0x3a3   :  { %v910_v19 = vpop.f32.mrb[10].mxu0 }
 0x3a4   :  { %629 = vst [vmem:[#allocation5 + $0x18] sm:$0xff] %v910_v19  ;;  %v597_v20 = vpop.f32.mrb[11].mxu0 }
 0x3a5   :  { %628 = vst [vmem:[#allocation5 + $0x10] sm:$0xff] %v597_v20 }
 0x3a7   :  { %v913_v22 = vpop.f32.mrb[12].mxu0 }
 0x3a8   :  { %631 = vst [vmem:[#allocation5 + $0x28] sm:$0xff] %v913_v22  ;;  %v607_v21 = vpop.f32.mrb[13].mxu0 }
 0x3a9   :  { %630 = vst [vmem:[#allocation5 + $0x20] sm:$0xff] %v607_v21 }
 0x3ab   :  { %v916_v23 = vpop.f32.mrb[14].mxu0 }
 0x3ac   :  { %633 = vst [vmem:[#allocation5 + $0x38] sm:$0xff] %v916_v23  ;;  %v617_v24 = vpop.f32.mrb[15].mxu0 }
 0x3ad   :  { %632 = vst [vmem:[#allocation5 + $0x30] sm:$0xff] %v617_v24 }
 0x3ae   :  { %1039 = shalt.err (!%p1036_p12)
}
 0x3af   :  { %s1040_s10 = scalar_lea.hbm %s1230_s4, 1024 }
 0x3b0   :  { %p1041_p13 = scmp.ne.s32.totalorder %s1230_s4, %s1040_s10  ;;  %p1044_p0 = scmp.lt.u32.totalorder %s1040_s10, %s1230_s4 }
 0x3b2   :  { %p1046_p1 = pnand %p1044_p0, %p1041_p13 }
 0x3b4   :  { %1049 = shalt.err (!%p1046_p1)
}
 0x3b5   :  { %s1059_s14 = smov 128   ;;  %s1060_s15 = smov 8  }
 0x3b6   :  { %645 = dma.vmem_to_hbm [thread:$0]  %s640_s6, 1024, %s1230_s4, [#allocation4], %s1059_s14, %s1059_s14, %s1060_s15  }
 0x3b7   :  { %1052 = dma.done.wait [#allocation4], 1024  }
 0x3b8   :  { %1053 = vsyncadd [#allocation4], 4294966272 }
 0x3b9   :  { %649 = vsyncpa [#allocation3], 1 }
 0x3ba   :  { %650 = vsyncpa [#allocation4], 1 }

</bundles_post_ra>
